<compile_context>
chip_gen: v6e
topology: v6e:2x2x1
jax: 0.10.0
libtpu: 0.0.40
codegen_flags: <defaults>
</compile_context>

<pallas_src>
import functools

import jax
import jax.numpy as jnp
from jax import lax
from jax.experimental import pallas as pl
from jax.experimental.pallas import tpu as pltpu


def voting_kernel(coefs_ref, x_ref, w_ref, b_ref, out_ref, *, M, C):
    """Single grid step: one wide matmul, then per-model vote accumulation."""
    # (B, D) @ (D, M*C) -> (B, M*C) on the MXU with f32 accumulation.
    logits_all = jnp.dot(x_ref[...], w_ref[...],
                         preferred_element_type=jnp.float32)
    logits_all = logits_all + b_ref[...]          # (1, M*C) broadcast over rows

    B = logits_all.shape[0]
    col = lax.broadcasted_iota(jnp.int32, (B, C), 1)   # lane indices, hoisted

    acc = jnp.zeros((B, C), jnp.float32)
    for i in range(M):                                 # unrolled (M is tiny)
        logits = logits_all[:, i * C:(i + 1) * C]      # lane-aligned slice
        m = jnp.max(logits, axis=-1, keepdims=True)    # (B, 1)
        # first-max index (torch.argmax tie-break) via min over matching lanes
        idx = jnp.min(jnp.where(logits == m, col, C), axis=-1, keepdims=True)
        acc = acc + jnp.where(col == idx, coefs_ref[i], jnp.float32(0.0))

    out_ref[...] = acc * jnp.float32(1.0 / M)


def voting_ensemble(x, weights, biases, coefs):
    """x: (B, D) f32; weights: (M, D, C); biases: (M, C); coefs: (M,) f32."""
    M, D, C = weights.shape
    B = x.shape[0]

    # Fuse the M classifiers into one wide matmul operand: (D, M*C).
    w_wide = jnp.transpose(weights, (1, 0, 2)).reshape(D, M * C)
    b_wide = biases.reshape(1, M * C)

    kernel = functools.partial(voting_kernel, M=M, C=C)

    return pl.pallas_call(
        kernel,
        out_shape=jax.ShapeDtypeStruct((B, C), jnp.float32),
        grid_spec=pltpu.PrefetchScalarGridSpec(
            num_scalar_prefetch=1,            # coefs -> SMEM, read as scalars
            grid=(1,),                        # single fused step
            in_specs=[
                pl.BlockSpec((B, D), lambda i, coefs: (0, 0)),        # x
                pl.BlockSpec((D, M * C), lambda i, coefs: (0, 0)),    # W (fused)
                pl.BlockSpec((1, M * C), lambda i, coefs: (0, 0)),    # b (fused)
            ],
            out_specs=pl.BlockSpec((B, C), lambda i, coefs: (0, 0)),
        ),
        compiler_params=pltpu.CompilerParams(
            dimension_semantics=("arbitrary",)),
    )(coefs, x, w_wide, b_wide)


def voting_ensemble_ref(x, weights, biases, coefs):
    """Pure-JAX reference mirroring the PyTorch forward."""
    M, _, C = weights.shape
    ans = jnp.zeros((x.shape[0], C), jnp.float32)
    for i in range(M):
        logits = x @ weights[i] + biases[i]
        pos = jnp.argmax(logits, axis=-1)
        ans = ans + jax.nn.one_hot(pos, C, dtype=jnp.float32) * coefs[i]
    return ans / M


if __name__ == "__main__":
    B, D, C, M = 8, 32, 128, 3

    key = jax.random.PRNGKey(0)
    kx, kw, kb = jax.random.split(key, 3)

    x = jax.random.normal(kx, (B, D), dtype=jnp.float32)
    weights = jax.random.normal(kw, (M, D, C), dtype=jnp.float32) * 0.1
    biases = jax.random.normal(kb, (M, C), dtype=jnp.float32) * 0.05
    coefs = jnp.array([1.0, 2.0, 0.5], dtype=jnp.float32)  # ensemble weights

    out = voting_ensemble(x, weights, biases, coefs)
    out = jax.block_until_ready(out)

    ref = voting_ensemble_ref(x, weights, biases, coefs)
    assert out.shape == (B, C) and out.dtype == jnp.float32
    assert jnp.allclose(out, ref, atol=1e-6), "mismatch vs reference"

    print("KERNEL_OK")
</pallas_src>

<mosaic_0001>
module attributes {stable_mosaic.version = 11 : i64} {
  func.func @voting_kernel(%arg0: i32, %arg1: memref<3xf32, #tpu.memory_space<smem>>, %arg2: memref<8x32xf32, #tpu.memory_space<vmem>>, %arg3: memref<32x384xf32, #tpu.memory_space<vmem>>, %arg4: memref<1x384xf32, #tpu.memory_space<vmem>>, %arg5: memref<8x128xf32, #tpu.memory_space<vmem>>) attributes {dimension_semantics = [#tpu.dimension_semantics<arbitrary>], iteration_bounds = array<i64: 1>, scalar_prefetch = 1 : i64, scratch_operands = 0 : i64, tpu.core_type = #tpu.core_type<tc>, window_params = [{pipeline_mode = #tpu.pipeline_mode<synchronous>, transform_indices = @transform_0, window_bounds = array<i64: 8, 32>}, {pipeline_mode = #tpu.pipeline_mode<synchronous>, transform_indices = @transform_1, window_bounds = array<i64: 32, 384>}, {pipeline_mode = #tpu.pipeline_mode<synchronous>, transform_indices = @transform_2, window_bounds = array<i64: 1, 384>}, {pipeline_mode = #tpu.pipeline_mode<synchronous>, transform_indices = @transform_3, window_bounds = array<i64: 8, 128>}]} {
    %c0 = arith.constant 0 : index
    %c0_0 = arith.constant 0 : index
    %0 = vector.load %arg2[%c0, %c0_0] : memref<8x32xf32, #tpu.memory_space<vmem>>, vector<8x32xf32>
    %c0_1 = arith.constant 0 : index
    %c0_2 = arith.constant 0 : index
    %1 = vector.load %arg3[%c0_1, %c0_2] : memref<32x384xf32, #tpu.memory_space<vmem>>, vector<32x384xf32>
    %cst = arith.constant dense<0.000000e+00> : vector<8x384xf32>
    %2 = tpu.matmul %0, %1, %cst {dimension_numbers = #tpu.dot_dimension_numbers<[1], [0], [0], [1], [0, 0, 1, 1], [], []>} : vector<8x32xf32>, vector<32x384xf32>, vector<8x384xf32> -> vector<8x384xf32>
    %c0_3 = arith.constant 0 : index
    %c0_4 = arith.constant 0 : index
    %3 = vector.load %arg4[%c0_3, %c0_4] : memref<1x384xf32, #tpu.memory_space<vmem>>, vector<1x384xf32>
    %4 = vector.broadcast %3 : vector<1x384xf32> to vector<8x384xf32>
    %5 = arith.addf %2, %4 : vector<8x384xf32>
    %6 = tpu.iota {dimensions = array<i32: 1>} : vector<8x128xi32>
    %cst_5 = arith.constant 0.000000e+00 : f32
    %7 = vector.broadcast %cst_5 : f32 to vector<8x128xf32>
    %8 = vector.extract_strided_slice %5 {offsets = [0, 0], sizes = [8, 128], strides = [1, 1]} : vector<8x384xf32> to vector<8x128xf32>
    %cst_6 = arith.constant dense<0xFF800000> : vector<8xf32>
    %9 = vector.multi_reduction <maximumf>, %8, %cst_6 [1] : vector<8x128xf32> to vector<8xf32>
    %10 = vector.shape_cast %9 : vector<8xf32> to vector<8x1xf32>
    %11 = vector.broadcast %10 : vector<8x1xf32> to vector<8x128xf32>
    %12 = arith.cmpf oeq, %8, %11 : vector<8x128xf32>
    %c128_i32 = arith.constant 128 : i32
    %13 = vector.broadcast %c128_i32 : i32 to vector<8x128xi32>
    %14 = arith.select %12, %6, %13 : vector<8x128xi1>, vector<8x128xi32>
    %cst_7 = arith.constant dense<2147483647> : vector<8xi32>
    %15 = vector.multi_reduction <minsi>, %14, %cst_7 [1] : vector<8x128xi32> to vector<8xi32>
    %16 = vector.shape_cast %15 : vector<8xi32> to vector<8x1xi32>
    %17 = vector.broadcast %16 : vector<8x1xi32> to vector<8x128xi32>
    %18 = arith.cmpi eq, %6, %17 : vector<8x128xi32>
    %c0_8 = arith.constant 0 : index
    %19 = memref.load %arg1[%c0_8] : memref<3xf32, #tpu.memory_space<smem>>
    %cst_9 = arith.constant 0.000000e+00 : f32
    %20 = vector.broadcast %19 : f32 to vector<8x128xf32>
    %21 = vector.broadcast %cst_9 : f32 to vector<8x128xf32>
    %22 = arith.select %18, %20, %21 : vector<8x128xi1>, vector<8x128xf32>
    %23 = arith.addf %7, %22 : vector<8x128xf32>
    %24 = vector.extract_strided_slice %5 {offsets = [0, 128], sizes = [8, 128], strides = [1, 1]} : vector<8x384xf32> to vector<8x128xf32>
    %cst_10 = arith.constant dense<0xFF800000> : vector<8xf32>
    %25 = vector.multi_reduction <maximumf>, %24, %cst_10 [1] : vector<8x128xf32> to vector<8xf32>
    %26 = vector.shape_cast %25 : vector<8xf32> to vector<8x1xf32>
    %27 = vector.broadcast %26 : vector<8x1xf32> to vector<8x128xf32>
    %28 = arith.cmpf oeq, %24, %27 : vector<8x128xf32>
    %c128_i32_11 = arith.constant 128 : i32
    %29 = vector.broadcast %c128_i32_11 : i32 to vector<8x128xi32>
    %30 = arith.select %28, %6, %29 : vector<8x128xi1>, vector<8x128xi32>
    %cst_12 = arith.constant dense<2147483647> : vector<8xi32>
    %31 = vector.multi_reduction <minsi>, %30, %cst_12 [1] : vector<8x128xi32> to vector<8xi32>
    %32 = vector.shape_cast %31 : vector<8xi32> to vector<8x1xi32>
    %33 = vector.broadcast %32 : vector<8x1xi32> to vector<8x128xi32>
    %34 = arith.cmpi eq, %6, %33 : vector<8x128xi32>
    %c1 = arith.constant 1 : index
    %35 = memref.load %arg1[%c1] : memref<3xf32, #tpu.memory_space<smem>>
    %cst_13 = arith.constant 0.000000e+00 : f32
    %36 = vector.broadcast %35 : f32 to vector<8x128xf32>
    %37 = vector.broadcast %cst_13 : f32 to vector<8x128xf32>
    %38 = arith.select %34, %36, %37 : vector<8x128xi1>, vector<8x128xf32>
    %39 = arith.addf %23, %38 : vector<8x128xf32>
    %40 = vector.extract_strided_slice %5 {offsets = [0, 256], sizes = [8, 128], strides = [1, 1]} : vector<8x384xf32> to vector<8x128xf32>
    %cst_14 = arith.constant dense<0xFF800000> : vector<8xf32>
    %41 = vector.multi_reduction <maximumf>, %40, %cst_14 [1] : vector<8x128xf32> to vector<8xf32>
    %42 = vector.shape_cast %41 : vector<8xf32> to vector<8x1xf32>
    %43 = vector.broadcast %42 : vector<8x1xf32> to vector<8x128xf32>
    %44 = arith.cmpf oeq, %40, %43 : vector<8x128xf32>
    %c128_i32_15 = arith.constant 128 : i32
    %45 = vector.broadcast %c128_i32_15 : i32 to vector<8x128xi32>
    %46 = arith.select %44, %6, %45 : vector<8x128xi1>, vector<8x128xi32>
    %cst_16 = arith.constant dense<2147483647> : vector<8xi32>
    %47 = vector.multi_reduction <minsi>, %46, %cst_16 [1] : vector<8x128xi32> to vector<8xi32>
    %48 = vector.shape_cast %47 : vector<8xi32> to vector<8x1xi32>
    %49 = vector.broadcast %48 : vector<8x1xi32> to vector<8x128xi32>
    %50 = arith.cmpi eq, %6, %49 : vector<8x128xi32>
    %c2 = arith.constant 2 : index
    %51 = memref.load %arg1[%c2] : memref<3xf32, #tpu.memory_space<smem>>
    %cst_17 = arith.constant 0.000000e+00 : f32
    %52 = vector.broadcast %51 : f32 to vector<8x128xf32>
    %53 = vector.broadcast %cst_17 : f32 to vector<8x128xf32>
    %54 = arith.select %50, %52, %53 : vector<8x128xi1>, vector<8x128xf32>
    %55 = arith.addf %39, %54 : vector<8x128xf32>
    %cst_18 = arith.constant 0.333333343 : f32
    %56 = vector.broadcast %cst_18 : f32 to vector<8x128xf32>
    %57 = arith.mulf %55, %56 : vector<8x128xf32>
    %c0_19 = arith.constant 0 : index
    %c0_20 = arith.constant 0 : index
    %58 = vector.load %arg5[%c0_19, %c0_20] : memref<8x128xf32, #tpu.memory_space<vmem>>, vector<8x128xf32>
    tpu.vector_store %arg5[%c0_19, %c0_20], %57 {strides = array<i32>} : memref<8x128xf32, #tpu.memory_space<vmem>>, vector<8x128xf32>,
    return
  }
  func.func @transform_0(%arg0: i32, %arg1: memref<3xf32, #tpu.memory_space<smem>>) -> (i32, i32) {
    %c0_i32 = arith.constant 0 : i32
    %c0_i32_0 = arith.constant 0 : i32
    %c0_i32_1 = arith.constant 0 : i32
    return %c0_i32, %c0_i32_0 : i32, i32
  }
  func.func @transform_1(%arg0: i32, %arg1: memref<3xf32, #tpu.memory_space<smem>>) -> (i32, i32) {
    %c0_i32 = arith.constant 0 : i32
    %c0_i32_0 = arith.constant 0 : i32
    %c0_i32_1 = arith.constant 0 : i32
    return %c0_i32, %c0_i32_0 : i32, i32
  }
  func.func @transform_2(%arg0: i32, %arg1: memref<3xf32, #tpu.memory_space<smem>>) -> (i32, i32) {
    %c0_i32 = arith.constant 0 : i32
    %c0_i32_0 = arith.constant 0 : i32
    %c0_i32_1 = arith.constant 0 : i32
    return %c0_i32, %c0_i32_0 : i32, i32
  }
  func.func @transform_3(%arg0: i32, %arg1: memref<3xf32, #tpu.memory_space<smem>>) -> (i32, i32) {
    %c0_i32 = arith.constant 0 : i32
    %c0_i32_0 = arith.constant 0 : i32
    %c0_i32_1 = arith.constant 0 : i32
    return %c0_i32, %c0_i32_0 : i32, i32
  }
}

</mosaic_0001>

<bundles_post_ra>
// kernel: tpu_custom_call.1
= control target key start
LH: loop header
LB: loop body
LE: loop exit
PB: predicated region body
PF: predicated region fallthrough
CT: control target
= control target key end

     0   :  { %s414_s15 = smov [#allocation3]   ;;  %s470_s0 = inlined_call_operand.hbm [shape: f32[3], index: 0, kind: input, shape index: {}]   ;;  %s471_s1 = inlined_call_operand.hbm [shape: f32[8,32], index: 1, kind: input, shape index: {}]   ;;  %s472_s2 = inlined_call_operand.hbm [shape: f32[32,384], index: 2, kind: input, shape index: {}]   ;;  %s473_s3 = inlined_call_operand.vmem [shape: f32[1,384], index: 3, kind: input, shape index: {}]   ;;  %s474_s4 = inlined_call_operand.hbm [shape: f32[8,128], index: 4, kind: output, shape index: {}]  }
   0x1   :  { %10 = dma.hbm_to_smem %s470_s0, 16, %s414_s15, [#allocation2] }
   0x2   :  { %406 = dma.done.wait [#allocation2], 16 }
   0x3   :  { %407 = vsyncadd [#allocation2], 4294967280 }
   0x4   :  { %12 = sfence }
   0x5   :  { %13 = vsyncpa [#allocation5], 0 }
   0x6   :  { %14 = vsyncpa [#allocation8], 0 }
   0x7   :  { %15 = vsyncpa [#allocation6], 0  ;;  %s415_s18 = smov [#allocation4]   ;;  %s416_s20 = smov [#allocation7]  }
   0x8   :  { %s22_s19 = sshll.u32 %s415_s18, 4  ;;  %s31_s21 = sshll.u32 %s416_s20, 4  ;;  %s23_s19 = int_to_ptr.vmem [resolvable:$true] %s22_s19  ;;  %s32_s21 = int_to_ptr.vmem [resolvable:$true] %s31_s21 }
   0x9   :  { %s354_s22 = scalar_lea.vmem %s23_s19, 128  ;;  %p359_p1 = scmp.lt.s32.totalorder %s23_s19, %s23_s19 }
   0xa   :  { %p355_p0 = scmp.ne.s32.totalorder %s23_s19, %s354_s22  ;;  %p360_p2 = scmp.lt.s32.totalorder %s354_s22, %s354_s22 }
   0xc   :  { %p361_p3 = por %p360_p2, %p359_p1 }
   0xe   :  { %p362_p4 = pnand %p361_p3, %p355_p0 }
  0x10   :  { %365 = shalt.err (!%p362_p4)
}
  0x11   :  { %25 = dma.hbm_to_vmem [thread:$0]  %s471_s1, 128, %s23_s19, [#allocation5]  }
  0x12   :  { %s374_s24 = scalar_lea.vmem %s32_s21, 1536  ;;  %p379_p6 = scmp.lt.s32.totalorder %s32_s21, %s32_s21 }
  0x13   :  { %p375_p5 = scmp.ne.s32.totalorder %s32_s21, %s374_s24  ;;  %p380_p7 = scmp.lt.s32.totalorder %s374_s24, %s374_s24 }
  0x15   :  { %p381_p8 = por %p380_p7, %p379_p6 }
  0x17   :  { %p382_p9 = pnand %p381_p8, %p375_p5 }
  0x19   :  { %385 = shalt.err (!%p382_p9)
}
  0x1a   :  { %s417_s25 = smov 384   ;;  %s418_s26 = smov 24  }
  0x1b   :  { %37 = dma.hbm_to_vmem [thread:$0]  %s472_s2, 1536, %s32_s21, [#allocation8], %s417_s25, %s417_s25, %s418_s26  }
  0x1c   :  { %408 = dma.done.wait [#allocation5], 128  }
  0x1d   :  { %409 = vsyncadd [#allocation5], 4294967168 }
  0x1e   :  { %410 = dma.done.wait [#allocation8], 1536  }
  0x1f   :  { %411 = vsyncadd [#allocation8], 4294965760  ;;  %v419_v0 = vmov 0.0   ;;  %vm420_vm0 = vmmov 0   ;;  %v57_v1 = vld [vmem:[#allocation7 + $0x50] sm:$0xff]  ;;  %v58_v2 = vld [vmem:[#allocation7 + $0x58] sm:$0xff]  ;;  %v61_v14 = vlaneseq }
  0x20   :  { %319 = vmatprep.subr.mxu1 %v419_v0  ;;  %327 = vmatprep.mubr.msk.f32.mxu1 %vm420_vm0, %v419_v0  ;;  %v56_v3 = vld [vmem:[#allocation7 + $0x48] sm:$0xff]  ;;  %v54_v4 = vld [vmem:[#allocation7 + $0x38] sm:$0xff]  ;;  %v55_v5 = vld [vmem:[#allocation7 + $0x40] sm:$0xff]  ;;  %vm76_vm1 = vcmask 261120   ;;  %s312_s29 = sld [smem:[#allocation3 + $0x1]]  ;;  %s421_s5 = smov [#allocation9]  }
  0x21   :  { %144 = vmatprep.mubr.f32.mxu0 %v419_v0  ;;  %104 = vmatprep.subr.mxu0 %v57_v1  ;;  %v53_v6 = vld [vmem:[#allocation7 + $0x30] sm:$0xff]  ;;  %v51_v7 = vld [vmem:[#allocation7 + $0x20] sm:$0xff]  ;;  %v52_v8 = vld [vmem:[#allocation7 + $0x28] sm:$0xff]  ;;  %v62_v15 = vshrl.u32 %v61_v14, 7  ;;  %v459_v30 = vand.u32 127, %v61_v14  ;;  %s313_s30 = sld [smem:[#allocation3 + $0x2]] }
  0x22   :  { %320 = vmatpush3.msra.mxu1 %v58_v2  ;;  %105 = vmatpush1.msra.mxu0 %v56_v3  ;;  %v50_v9 = vld [vmem:[#allocation7 + $0x18] sm:$0xff]  ;;  %v48_v10 = vld [vmem:[#allocation7 + $0x8] sm:$0xff]  ;;  %v49_v11 = vld [vmem:[#allocation7 + $0x10] sm:$0xff]  ;;  %s300_s6 = sshll.u32 %s421_s5, 4  ;;  %s301_s6 = int_to_ptr.vmem [resolvable:$true] %s300_s6 }
  0x23   :  { %321 = vmatprep.subr.mxu1 %v419_v0  ;;  %106 = vmatprep.subr.mxu0 %v54_v4  ;;  %v47_v12 = vld [vmem:[#allocation7] sm:$0xff]  ;;  %v46_v13 = vld [vmem:[#allocation4] sm:$0xff]  ;;  %v71_v16 = vsub.s32 2, %v62_v15  ;;  %v63_v18 = vsub.s32 0, %v62_v15  ;;  %v67_v21 = vsub.s32 1, %v62_v15  ;;  %s386_s7 = scalar_lea.vmem %s301_s6, 128  ;;  %p391_p11 = scmp.lt.s32.totalorder %s301_s6, %s301_s6 }
  0x24   :  { %322 = vmatpush3.msra.mxu1 %v55_v5  ;;  %107 = vmatpush1.msra.mxu0 %v53_v6  ;;  %v59_v17 = vld [vmem:[%s473_s3] sm:$0x7]  ;;  %s242_s3 = sld [smem:[#allocation3]]  ;;  %p387_p10 = scmp.ne.s32.totalorder %s301_s6, %s386_s7 }
  0x25   :  { %323 = vmatprep.subr.mxu1 %v419_v0  ;;  %108 = vmatprep.subr.mxu0 %v51_v7  ;;  %v72_v19 = vrot.slane %v59_v17, %v71_v16  ;;  %v64_v20 = vrot.slane %v59_v17, %v63_v18  ;;  %v68_v26 = vrot.slane %v59_v17, %v67_v21  ;;  %p392_p12 = scmp.lt.s32.totalorder %s386_s7, %s386_s7 }
  0x26   :  { %324 = vmatpush3.msra.mxu1 %v52_v8  ;;  %109 = vmatpush1.msra.mxu0 %v50_v9  ;;  %v266_v6 = vstv %s312_s29 }
  0x27   :  { %325 = vmatprep.subr.mxu1 %v419_v0  ;;  %110 = vmatprep.subr.mxu0 %v48_v10  ;;  %v289_v8 = vstv %s313_s30  ;;  %p393_p13 = por %p392_p12, %p391_p11 }
  0x28   :  { %326 = vmatpush3.msra.mxu1 %v49_v11  ;;  %111 = vmatpush1.msra.mxu0 %v47_v12 }
  0x29   :  { %328 = vmatmul.mubr.msk.f32.vlgmr.msra.gmra.mxu1 %vm76_vm1, %v46_v13  ;;  %310 = vmatmul.mubr.msk.f32.vlgmr.msra.gmra.mxu0 %vm76_vm1, %v46_v13  ;;  %p394_p0 = pnand %p393_p13, %p387_p10 }
  0x2a   :  { %v243_v4 = vstv %s242_s3 }
  0xe9   :  { %v217_v22 = vpop.f32.mrf.mxu1  ;;  %v146_v24 = vpop.f32.mrf.mxu0 }
  0xea   :  { %v218_v23 = vadd.f32 %v217_v22, %v72_v19  ;;  %v147_v25 = vadd.f32 %v146_v24, %v64_v20 }
  0xeb   :  { %v329_v27 = vpop.f32.mrf.mxu1  ;;  %v148_v28 = vpop.f32.mrf.mxu0 }
  0xec   :  { %269 = vmax.xlane.f32.xlu1 %v218_v23  ;;  %223 = vmax.xlane.f32.xlu0 %v147_v25  ;;  %v149_v29 = vadd.f32 %v148_v28, %v68_v26 }
  0xf0   :  { %246 = vmax.xlane.f32.xlu0 %v149_v29 }
 0x175   :  { %v270_v31 = vpop.xlane.xlu1 %269  ;;  %v224_v32 = vpop.xlane.xlu0 %223 }
 0x176   :  { %vm271_vm2 = vcmp.eq.f32.partialorder %v218_v23, %v270_v31  ;;  %vm225_vm3 = vcmp.eq.f32.partialorder %v147_v25, %v224_v32 }
 0x177   :  { %v272_v33 = vsel %vm271_vm2, %v459_v30, 128  ;;  %v226_v34 = vsel %vm225_vm3, %v459_v30, 128 }
 0x178   :  { %v228_v35 = vshra.s32 %v226_v34, 16  ;;  %v274_v38 = vshra.s32 %v272_v33, 16  ;;  %v227_v43 = vand.u32 65535, %v226_v34  ;;  %v273_v44 = vand.u32 65535, %v272_v33 }
 0x179   :  { %v247_v36 = vpop.xlane.xlu0 %246 }
 0x17a   :  { %vm248_vm4 = vcmp.eq.f32.partialorder %v149_v29, %v247_v36  ;;  %v230_v37 = vcvt.s32.f32 %v228_v35  ;;  %v276_v41 = vcvt.s32.f32 %v274_v38  ;;  %v229_v47 = vcvt.s32.f32 %v227_v43 }
 0x17b   :  { %v249_v39 = vsel %vm248_vm4, %v459_v30, 128  ;;  %v275_v51 = vcvt.s32.f32 %v273_v44 }
 0x17c   :  { %231 = vmin.xlane.f32.xlu1 %v230_v37  ;;  %v251_v40 = vshra.s32 %v249_v39, 16  ;;  %v250_v45 = vand.u32 65535, %v249_v39 }
 0x17e   :  { %v253_v42 = vcvt.s32.f32 %v251_v40  ;;  %v252_v52 = vcvt.s32.f32 %v250_v45 }
 0x180   :  { %277 = vmin.xlane.f32.xlu1 %v276_v41  ;;  %254 = vmin.xlane.f32.xlu0 %v253_v42 }
 0x205   :  { %v232_v46 = vpop.xlane.xlu1 %231 }
 0x206   :  { %vm233_vm5 = vcmp.eq.f32.partialorder %v230_v37, %v232_v46  ;;  %v238_v55 = vcvt.f32.s32 %v232_v46 }
 0x207   :  { %v234_v48 = vsel %vm233_vm5, %v229_v47, inf }
 0x208   :  { %235 = vmin.xlane.f32.xlu0 %v234_v48  ;;  %v239_v57 = vshll.u32 %v238_v55, 16 }
 0x209   :  { %v278_v49 = vpop.xlane.xlu1 %277  ;;  %v255_v50 = vpop.xlane.xlu0 %254 }
 0x20a   :  { %vm279_vm6 = vcmp.eq.f32.partialorder %v276_v41, %v278_v49  ;;  %vm256_vm7 = vcmp.eq.f32.partialorder %v253_v42, %v255_v50  ;;  %v284_v58 = vcvt.f32.s32 %v278_v49  ;;  %v261_v59 = vcvt.f32.s32 %v255_v50 }
 0x20b   :  { %v280_v53 = vsel %vm279_vm6, %v275_v51, inf  ;;  %v257_v54 = vsel %vm256_vm7, %v252_v52, inf }
 0x20c   :  { %281 = vmin.xlane.f32.xlu0 %v280_v53  ;;  %258 = vmin.xlane.f32.xlu1 %v257_v54  ;;  %v285_v0 = vshll.u32 %v284_v58, 16  ;;  %v262_v1 = vshll.u32 %v261_v59, 16 }
 0x291   :  { %v236_v56 = vpop.xlane.xlu0 %235 }
 0x292   :  { %v237_v60 = vcvt.f32.s32 %v236_v56 }
 0x294   :  { %v240_v61 = vadd.s32 %v239_v57, %v237_v60 }
 0x295   :  { %v282_v62 = vpop.xlane.xlu0 %281  ;;  %v259_v63 = vpop.xlane.xlu1 %258 }
 0x296   :  { %v283_v2 = vcvt.f32.s32 %v282_v62  ;;  %v260_v3 = vcvt.f32.s32 %v259_v63  ;;  %vm241_vm8 = vcmp.eq.s32.totalorder %v459_v30, %v240_v61 }
 0x297   :  { %v244_v9 = vsel %vm241_vm8, %v243_v4, 0.0 }
 0x298   :  { %v286_v5 = vadd.s32 %v285_v0, %v283_v2  ;;  %v263_v7 = vadd.s32 %v262_v1, %v260_v3 }
 0x29a   :  { %vm287_vm9 = vcmp.eq.s32.totalorder %v459_v30, %v286_v5  ;;  %vm264_vm10 = vcmp.eq.s32.totalorder %v459_v30, %v263_v7 }
 0x29b   :  { %v267_v10 = vsel %vm264_vm10, %v266_v6, 0.0  ;;  %v290_v12 = vsel %vm287_vm9, %v289_v8, 0.0 }
 0x29c   :  { %v268_v11 = vadd.f32 %v267_v10, %v244_v9 }
 0x29e   :  { %v291_v13 = vadd.f32 %v290_v12, %v268_v11 }
 0x2a0   :  { %v292_v14 = vmul.f32 0.33333334, %v291_v13 }
 0x2a2   :  { %293 = vst [vmem:[#allocation9] sm:$0xff] %v292_v14 }
 0x2a3   :  { %397 = shalt.err (!%p394_p0)
}
 0x2a4   :  { %303 = dma.vmem_to_hbm [thread:$0]  %s301_s6, 128, %s474_s4, [#allocation6]  }
 0x2a5   :  { %412 = dma.done.wait [#allocation6], 128  }
 0x2a6   :  { %413 = vsyncadd [#allocation6], 4294967168 }
 0x2a7   :  { %307 = vsyncpa [#allocation5], 1 }
 0x2a8   :  { %308 = vsyncpa [#allocation8], 1 }
 0x2a9   :  { %309 = vsyncpa [#allocation6], 1 }

</bundles_post_ra>
